<compile_context>
chip_gen: v7x
topology: tpu7x:2x2x1
jax: 0.10.0
libtpu: 0.0.40
codegen_flags: <defaults>
</compile_context>

<pallas_src>
import math

import jax
import jax.numpy as jnp
from jax.experimental import pallas as pl
from jax.experimental.pallas import tpu as pltpu


def _upsample_kernel(x_ref, ew_ref, o_ref):
    """One grid step.

    x_ref:  (block_rows, k*W)        k fused input image rows per kernel row
    ew_ref: (k*W, k*s*s*W)           block-diagonal one-hot expansion (resident)
    o_ref:  (block_rows, k*s*s*W)    H- and W-replicated rows, lane-dense store

    The one-hot dot is an exact nearest-neighbor gather, so accumulate directly in
    the output dtype (exact for f32 and bf16; saves a cast pass and vreg pressure).
    """
    o_ref[...] = jnp.dot(x_ref[...], ew_ref[...],
                         preferred_element_type=o_ref.dtype)


def _sublane_multiple(dtype):
    """Sublane packing multiple: 8 for 4-byte, 16 for 2-byte, 32 for 1-byte dtypes."""
    itemsize = jnp.dtype(dtype).itemsize
    return max(8, 32 // max(itemsize, 1))


def _pick_row_group(R, W, s):
    """Number of consecutive input rows fused per kernel row so the output row width
    (k*s*s*W elements) is a multiple of 128 lanes (unmasked stores). k must divide R
    (free reshape) and k*W is capped so the folded matmul stays memory-bound."""
    s2w = s * s * W
    if s2w % 128 == 0:
        return 1
    k_min = 128 // math.gcd(128, s2w)
    kw_cap = 128        # 2*k*W/itemsize flop per output byte stays << mem-bound roofline
    k = k_min
    while k * W <= kw_cap:
        if R % k == 0:
            return k
        k += k_min
    return 1


def _pick_block_rows(total_rows, row_bytes, sub_mult, target_bytes, min_grid=4):
    """Largest sublane-aligned block <= ~target bytes of (in+out); capped so the grid
    has >= min_grid steps when possible. No 'must divide total_rows' requirement —
    the caller uses a cdiv grid and Pallas masks the partial final block."""
    if total_rows <= sub_mult:
        return total_rows                      # full extent is always a legal block
    br = max(sub_mult, target_bytes // max(row_bytes, 1))
    if total_rows > min_grid * sub_mult:
        br = min(br, -(-total_rows // min_grid))   # cdiv -> at least min_grid steps
    br = max(sub_mult, (br // sub_mult) * sub_mult)
    if br >= total_rows:
        return total_rows
    return int(br)


def upsample_nearest(x, scale_factor):
    """Nearest-neighbor upsample of an NCHW tensor by an integer scale factor.

    Matches torch.nn.functional.interpolate(x, scale_factor=s, mode='nearest')
    for floating-point inputs (the one-hot selection is exact).
    """
    s = int(scale_factor)
    assert s == scale_factor and s >= 1, "integer scale_factor only"
    if s == 1:
        return x
    assert jnp.issubdtype(x.dtype, jnp.floating), "floating dtypes only"
    # TODO(synk): integer dtypes would need a VPU-select path (no integer MXU on v7x).

    N, C, H, W = x.shape
    Hs, Ws = H * s, W * s
    s2w = s * s * W                   # flat output elements produced per input row
    R = N * C * H                     # independent input rows
    itemsize = jnp.dtype(x.dtype).itemsize

    k = _pick_row_group(R, W, s)
    Rg = R // k
    in_w, out_w = k * W, k * s2w

    # Free, contiguous view (no data movement in the wrapper).
    x2 = x.reshape(Rg, in_w)

    # Block-diagonal (over the k fused rows) one-hot expansion matrix, in x.dtype:
    #   ew[a, b] = 1  iff  a and b belong to the same fused row AND the
    #                      nearest-neighbor source column of b is a.
    rows = jnp.arange(in_w, dtype=jnp.int32)
    cols = jnp.arange(out_w, dtype=jnp.int32)
    same_group = (rows[:, None] // W) == (cols[None, :] // s2w)
    src_col = ((cols[None, :] % s2w) % Ws) // s
    ew = (same_group & (src_col == (rows[:, None] % W))).astype(x.dtype)
    ew_bytes = in_w * out_w * itemsize

    sub_mult = _sublane_multiple(x.dtype)
    row_bytes = (in_w + out_w) * itemsize
    # ~4-8 MiB (in+out) per step; shrink if the resident matrix is unusually large.
    vmem_budget = 40 * 1024 * 1024
    target_bytes = min(6 * 1024 * 1024,
                       max(1 * 1024 * 1024, (vmem_budget - 2 * ew_bytes) // 4))
    block_rows = _pick_block_rows(Rg, row_bytes, sub_mult, target_bytes)
    grid = (pl.cdiv(Rg, block_rows),)

    flops = 2 * Rg * in_w * out_w
    bytes_accessed = (R * W + R * s2w) * itemsize + ew_bytes

    out2 = pl.pallas_call(
        _upsample_kernel,
        out_shape=jax.ShapeDtypeStruct((Rg, out_w), x.dtype),
        grid_spec=pltpu.PrefetchScalarGridSpec(
            num_scalar_prefetch=0,
            grid=grid,
            in_specs=[
                pl.BlockSpec((block_rows, in_w), lambda g: (g, 0)),
                pl.BlockSpec((in_w, out_w), lambda g: (0, 0)),  # constant -> resident
            ],
            out_specs=pl.BlockSpec((block_rows, out_w), lambda g: (g, 0)),
        ),
        compiler_params=pltpu.CompilerParams(
            dimension_semantics=("parallel",),   # shard grid across both TCs on v7x
            vmem_limit_bytes=48 * 1024 * 1024,   # safe on v7x's 64 MiB; plenty on v5e/v6e
        ),
        cost_estimate=pl.CostEstimate(
            flops=flops, transcendentals=0, bytes_accessed=bytes_accessed),
    )(x2, ew)

    # (Rg, k*s*s*W) row-major is exactly NCHW (N, C, Hs, Ws) row-major -> free reshape.
    return out2.reshape(N, C, Hs, Ws)


class Upsample:
    """Pallas equivalent of the PyTorch Upsample module (mode='nearest')."""

    def __init__(self, scale_factor, mode="nearest"):
        assert mode == "nearest", "only 'nearest' mode is implemented"
        self.scale_factor = scale_factor
        self.mode = mode

    def __call__(self, x):
        return upsample_nearest(x, self.scale_factor)


if __name__ == "__main__":
    key = jax.random.PRNGKey(0)
    N, C, H, W = 2, 4, 16, 16
    scale = 2
    x = jax.random.normal(key, (N, C, H, W), dtype=jnp.float32)

    model = Upsample(scale_factor=scale, mode="nearest")
    out = jax.block_until_ready(model(x))

    # Reference: nearest upsample via jnp.repeat (matches F.interpolate 'nearest').
    ref = jnp.repeat(jnp.repeat(x, scale, axis=2), scale, axis=3)
    assert out.shape == (N, C, H * scale, W * scale), out.shape
    assert out.dtype == x.dtype
    assert bool(jnp.array_equal(out, ref)), "mismatch vs reference"

    # Also exercise the non-dividing row count / partial final block path (odd R).
    x_odd = jax.random.normal(jax.random.PRNGKey(1), (1, 3, 13, 13), dtype=jnp.float32)
    out_odd = jax.block_until_ready(upsample_nearest(x_odd, 2))
    ref_odd = jnp.repeat(jnp.repeat(x_odd, 2, axis=2), 2, axis=3)
    assert bool(jnp.array_equal(out_odd, ref_odd)), "mismatch vs reference (odd shape)"

    print("KERNEL_OK")
</pallas_src>

<mosaic_0001>
module attributes {stable_mosaic.version = 11 : i64} {
  func.func @_upsample_kernel(%arg0: i32, %arg1: memref<16x32xf32, #tpu.memory_space<vmem>>, %arg2: memref<32x128xf32, #tpu.memory_space<vmem>>, %arg3: memref<16x128xf32, #tpu.memory_space<vmem>>) attributes {dimension_semantics = [#tpu.dimension_semantics<parallel>], iteration_bounds = array<i64: 4>, scalar_prefetch = 0 : i64, scratch_operands = 0 : i64, tpu.core_type = #tpu.core_type<tc>, window_params = [{transform_indices = @transform_0, window_bounds = array<i64: 16, 32>}, {pipeline_mode = #tpu.pipeline_mode<synchronous>, transform_indices = @transform_1, window_bounds = array<i64: 32, 128>}, {transform_indices = @transform_2, window_bounds = array<i64: 16, 128>}]} {
    %c0 = arith.constant 0 : index
    %c0_0 = arith.constant 0 : index
    %0 = vector.load %arg1[%c0, %c0_0] : memref<16x32xf32, #tpu.memory_space<vmem>>, vector<16x32xf32>
    %c0_1 = arith.constant 0 : index
    %c0_2 = arith.constant 0 : index
    %1 = vector.load %arg2[%c0_1, %c0_2] : memref<32x128xf32, #tpu.memory_space<vmem>>, vector<32x128xf32>
    %cst = arith.constant dense<0.000000e+00> : vector<16x128xf32>
    %2 = tpu.matmul %0, %1, %cst {dimension_numbers = #tpu.dot_dimension_numbers<[1], [0], [0], [1], [0, 0, 1, 1], [], []>} : vector<16x32xf32>, vector<32x128xf32>, vector<16x128xf32> -> vector<16x128xf32>
    %c0_3 = arith.constant 0 : index
    %c0_4 = arith.constant 0 : index
    %3 = vector.load %arg3[%c0_3, %c0_4] : memref<16x128xf32, #tpu.memory_space<vmem>>, vector<16x128xf32>
    tpu.vector_store %arg3[%c0_3, %c0_4], %2 {strides = array<i32>} : memref<16x128xf32, #tpu.memory_space<vmem>>, vector<16x128xf32>,
    return
  }
  func.func @transform_0(%arg0: i32) -> (i32, i32) {
    %c0_i32 = arith.constant 0 : i32
    %c0_i32_0 = arith.constant 0 : i32
    return %arg0, %c0_i32 : i32, i32
  }
  func.func @transform_1(%arg0: i32) -> (i32, i32) {
    %c0_i32 = arith.constant 0 : i32
    %c0_i32_0 = arith.constant 0 : i32
    %c0_i32_1 = arith.constant 0 : i32
    return %c0_i32, %c0_i32_0 : i32, i32
  }
  func.func @transform_2(%arg0: i32) -> (i32, i32) {
    %c0_i32 = arith.constant 0 : i32
    %c0_i32_0 = arith.constant 0 : i32
    return %arg0, %c0_i32 : i32, i32
  }
}

</mosaic_0001>

<bundles_post_ra>
// kernel: tpu_custom_call.1
= control target key start
LH: loop header
LB: loop body
LE: loop exit
PB: predicated region body
PF: predicated region fallthrough
CT: control target
= control target key end

     0   :  { %7 = vsyncpa [#allocation3], 0  ;;  %s588_s0 = inlined_call_operand.vmem [shape: f32[64,32], index: 0, kind: input, shape index: {}]   ;;  %s589_s1 = inlined_call_operand.vmem [shape: f32[32,128], index: 1, kind: input, shape index: {}]   ;;  %s590_s2 = inlined_call_operand.hbm [shape: f32[64,128], index: 2, kind: output, shape index: {}]  }
   0x1   :  { %9 = vsyncpa [#allocation3 + $0x1], 0  ;;  %s474_s9 = smov 0   ;;  %s476_s10 = smov 0  }
   0x2   :  { %s478_s11 = smov 0   ;;  %s480_s12 = smov 0  }
   0x3 LB: > { %s495_s13 = sadd.s32 4294967295, %s454_s12   ;;  %s311_s14 = sadd.s32 4294967294, %s454_s12   ;;  %s454_s12 = sphi %s480_s12, %s596_s12   ;;  %s450_s11 = sphi %s478_s11, %s595_s11   ;;  %s446_s10 = sphi %s476_s10, %s594_s10   ;;  %s442_s9 = sphi %s474_s9, %s593_s9  }
   0x4   : > { %s499_s15 = sadd.s32 1, %s454_s12   ;;  %s69_s16 = sadd.s32 1, %s450_s11 }
   0x5   : > { %s66_s17 = ssub.s32 %s454_s12, %s499_s15  ;;  %p79_p0 = scmp.ne.s32.totalorder %s450_s11, %s446_s10 }
   0x6   : > { %p67_p1 = scmp.eq.s32.totalorder %s66_s17, 0  ;;  %p80_p2 = scmp.eq.s32.totalorder %s495_s13, 3 }
   0x7   : > { %p85_p3 = scmp.ne.s32.totalorder %s446_s10, %s442_s9  ;;  %p86_p4 = scmp.eq.s32.totalorder %s311_s14, 3 }
   0x8   : > { %s510_s18 = scalar_select %p67_p1, %s450_s11, %s69_s16  }
   0x9   : > { %p512_p5 = por %p80_p2, %p79_p0  ;;  %p516_p6 = por %p86_p4, %p85_p3 }
   0xa   : > { %p314_p7 = scmp.ge.s32.totalorder %s454_s12, 1  ;;  %p116_p8 = scmp.lt.s32.totalorder %s454_s12, 5 }
   0xc   : > { %p117_p9 = pnand %p314_p7, %p116_p8 }
   0xd   : > { %v147_v0 = vld [vmem:[%s589_s1] sm:$0xff] (!%p117_p9)  ;;  %v148_v1 = vld [vmem:[%s589_s1 + $0x8] sm:$0xff] (!%p117_p9)  ;;  %v149_v2 = vld [vmem:[%s589_s1 + $0x10] sm:$0xff] (!%p117_p9)  ;;  %s316_s27 = sshll.u32 (!%p117_p9), %s495_s13, 1  ;;  %vm151_vm0 = vcmask (!%p117_p9), 261120   ;;  %s135_s6 = sand.u32 (!%p117_p9), 1, %s446_s10  }
   0xe   : > { %120 = sbr.rel (%p117_p9) target bundleno = 254 (0xfe), region = 28  ;;  %v343_v3 = vpack.c.bf16 (!%p117_p9), %v148_v1, %v147_v0  ;;  %v150_v4 = vld [vmem:[%s589_s1 + $0x18] sm:$0xff] (!%p117_p9)  ;;  %p139_p10 = scmp.lt.s32.totalorder (!%p117_p9), %s316_s27, 7 }
   0xf   : > { %v347_v5 = vpack.c.bf16 (!%p117_p9), %v150_v4, %v149_v2  ;;  %s315_s7 = sshll.u32 (!%p117_p9), %s135_s6, 4  ;;  %s325_s16 = sshll.u32 (!%p117_p9), %s495_s13, 8 }
  0x10   : > { %344 = vmatprep.subr.bf16.mxu0 (!%p117_p9), %v343_v3  ;;  %s137_s8 = scalar_lea.vmem (!%p117_p9), [#allocation2], %s315_s7  ;;  %s545_s22 = scalar_lea.hbm (!%p117_p9), %s590_s2, %s325_s16 }
  0x11   : > { %346 = vmatpush3.bf16.msra.mxu0 (!%p117_p9), %v343_v3  ;;  %s249_s14 = sshll.u32 (!%p117_p9), %s137_s8, 4  ;;  %s547_s23 = scalar_lea.sflag (!%p117_p9), [#allocation3], %s135_s6  ;;  %s540_s14 = int_to_ptr.vmem [resolvable:$true] %s249_s14 }
  0x12   : > { %348 = vmatprep.subr.bf16.mxu0 (!%p117_p9), %v347_v5  ;;  %s392_s24 = scalar_lea.vmem (!%p117_p9), %s540_s14, 256  ;;  %s456_s13 = smov (!%p117_p9), [#allocation2]  }
  0x13   : > { %p393_p11 = scmp.ne.s32.totalorder (!%p117_p9), %s540_s14, %s392_s24  ;;  %s396_s25 = sshll.u32 (!%p117_p9), %s456_s13, 4  ;;  %s397_s25 = int_to_ptr.vmem [resolvable:$false] %s396_s25 }
  0x14   : > { %s398_s26 = scalar_lea.vmem (!%p117_p9), %s397_s25, 512  ;;  %p399_p0 = scmp.lt.s32.totalorder (!%p117_p9), %s540_s14, %s397_s25 }
  0x15   : > { %s598_s27 = smov (!%p139_p10, %s316_s27), 7  ;;  %350 = vmatpush3.bf16.msra.mxu0 %v347_v5  ;;  %p394_p12 = pnand %p393_p11, %p512_p5 }
  0x16   : > { %s317_s30 = sshll.u32 %s598_s27, 3  ;;  %p400_p1 = scmp.lt.s32.totalorder %s398_s26, %s392_s24 }
  0x17   : > { %s142_s5 = scalar_lea.vmem %s588_s0, %s317_s30  ;;  %p395_p13 = pneg %p394_p12 }
  0x18   : > { %v145_v6 = vld [vmem:[%s142_s5] sm:$0xff]  ;;  %v146_v7 = vld [vmem:[%s142_s5 + $0x8] sm:$0xff]  ;;  %p401_p2 = por %p400_p1, %p399_p0 }
  0x19   : > { %340 = vmatprep.mubr.msk.f32.mxu0 %vm151_vm0, %v145_v6 }
  0x1a   : > { %341 = vmatmul.mubr.msk.f32.vlgmr.msra.gmra.mrb[0].mxu0 %vm151_vm0, %v146_v7  ;;  %p402_p3 = pnand %p401_p2, %p395_p13 }
  0xed   : > { %v342_v8 = vpop.f32.mrb[0].mxu0 }
  0xee   : > { %234 = vst [vmem:[%s137_s8 + $0x8] sm:$0xff] %v342_v8  ;;  %v224_v9 = vpop.f32.mrb[1].mxu0 }
  0xef   : > { %233 = vst [vmem:[%s137_s8] sm:$0xff] %v224_v9 }
  0xf0   : > { %405 = shalt.err (!%p402_p3)
}
  0xf1   : > { %s406_s27 = scalar_lea.hbm %s545_s22, 256  ;;  %s410_s30 = scalar_lea.hbm %s590_s2, 1024 }
  0xf2   : > { %p407_p4 = scmp.ne.s32.totalorder %s545_s22, %s406_s27  ;;  %p411_p9 = scmp.lt.u32.totalorder %s545_s22, %s590_s2 }
  0xf3   : > { %p412_p10 = scmp.lt.u32.totalorder %s410_s30, %s406_s27  ;;  %p414_p12 = scmp.lt.u32.totalorder %s406_s27, %s545_s22 }
  0xf4   : > { %p408_p7 = pnand %p407_p4, %p512_p5 }
  0xf5   : > { %p413_p11 = por %p412_p10, %p411_p9 }
  0xf6   : > { %p409_p8 = pneg %p408_p7 }
  0xf7   : > { %p415_p13 = por %p414_p12, %p413_p11 }
  0xf9   : > { %p416_p0 = pnand %p415_p13, %p409_p8 }
  0xfb   : > { %419 = shalt.err (!%p416_p0)
}
  0xfc   : > { %s457_s5 = smov 128   ;;  %s458_s6 = smov 8  }
  0xfd   : > { %351 = dma.vmem_to_hbm [thread:$0]  (%p512_p5), %s540_s14, 256, %s545_s22, %s547_s23, %s457_s5, %s457_s5, %s458_s6  }
  0xfe PF: > { %p357_p1 = scmp.ge.s32.totalorder %s454_s12, 2  ;;  %s264_s7 = sand.u32 1, %s442_s9  }
  0xff   : > { %s265_s8 = scalar_lea.sflag [#allocation3], %s264_s7 }
 0x100   : > { %p354_p2 = pnand %p357_p1, %p516_p6 }
 0x102   : > { %437 = dma.done.wait (!%p354_p2), %s265_s8, 256  }
 0x103   : > { %439 = vsyncadd (!%p354_p2), %s265_s8, 4294967040  ;;  %p12_p3 = scmp.ge.s32.totalorder %s499_s15, 6   ;;  %s593_s9 = smov %s446_s10 }
 0x104   : > { %s594_s10 = smov %s450_s11  ;;  %s595_s11 = smov %s510_s18 }
 0x105   : > { %s596_s12 = smov %s499_s15  ;;  %14 = sbr.rel (!%p12_p3) target bundleno = 3 (0x3), region = 63 }
 0x10c   :  { %270 = vsyncpa [#allocation3], 1 }
 0x10d   :  { %272 = vsyncpa [#allocation3 + $0x1], 1 }

</bundles_post_ra>
